<compile_context>
chip_gen: v5e
topology: v5e:2x2
jax: 0.10.0
libtpu: 0.0.40
codegen_flags: <defaults>
</compile_context>

<pallas_src>
import functools
import math

import jax
import jax.numpy as jnp
from jax.experimental import pallas as pl
from jax.experimental.pallas import tpu as pltpu


# ---------------------------------------------------------------------------
# helpers
# ---------------------------------------------------------------------------
def _round_up(x, m):
    return ((x + m - 1) // m) * m


def _cdiv(a, b):
    return -(-a // b)


def _pad2(a, rows, cols):
    r, c = a.shape
    return jnp.pad(a, ((0, rows - r), (0, cols - c)))


def _apply_activation(y, activation):
    # Same definitions as get_activation_function() in HyperRoad.py
    if activation == "relu":
        return jnp.maximum(y, 0.0)
    if activation == "leakyrelu":
        return jnp.where(y > 0.0, y, 0.2 * y)      # negative_slope=0.2 per spec
    if activation == "sigmoid":
        return 1.0 / (1.0 + jnp.exp(-y))           # EUP exp
    if activation == "tanh":
        return jnp.tanh(y)
    raise ValueError(f"unsupported activation: {activation}")


def _const_index_map(ndim):
    def im(i):
        return (0,) * ndim
    return im


def _choose_tm(m, tm_max=512, min_steps=4):
    """Batch tile: multiple of 8, <= tm_max, and >= min_steps grid steps
    whenever the batch permits (pipelining + v7x 2-TC sharding)."""
    m8 = _round_up(max(m, 1), 8)
    tm = min(tm_max, m8)
    if m8 // tm < min_steps:
        target = _round_up(_cdiv(m8, min_steps), 8)
        tm = max(8, min(tm, target))
    return tm


# ---------------------------------------------------------------------------
# Fused Pallas kernel: all layers of MultiLayerFeedForwardNN in one pass.
# ---------------------------------------------------------------------------
def _fused_ffn_kernel(*refs, layer_cfg, activation, eps):
    L = len(layer_cfg)
    x_ref = refs[0]
    w_refs = refs[1:1 + L]        # per-layer weights, each (k_pad_l, n_pad_l)
    slab_ref = refs[1 + L]        # (L, 8, b_pad) f32: rows 0=b, 1=gamma, 2=beta
    o_ref = refs[2 + L]

    h = x_ref[...].astype(jnp.float32)                       # [tm, k_pad0]

    # Static (trace-time) loop over layers; L is small so unrolling is fine,
    # and per-layer config (layernorm / skip / real & padded widths) is static.
    for l, (use_ln, skip, d_out_real, n_pad) in enumerate(layer_cfg):
        w = w_refs[l][...]                                   # bf16 (or f32)
        # Linear on the MXU, f32 accumulation; padded rows/cols of W are zero.
        y = jnp.dot(h.astype(w.dtype), w, preferred_element_type=jnp.float32)

        slab_l = slab_ref[l]                                 # (8, b_pad) f32
        y = y + slab_l[0:1, :n_pad]                          # bias (padded = 0)

        # Activation (VPU / EUP).
        y = _apply_activation(y, activation)

        # TODO(synk): training-mode dropout not implemented (eval = identity).

        if activation == "sigmoid":
            # Only sigmoid maps padded-lane zeros to 0.5; zero them so padded
            # lanes stay exactly 0 (keeps LN sums / skip chain exact).
            lane = jax.lax.broadcasted_iota(jnp.int32, (1, n_pad), 1)
            y = jnp.where(lane < d_out_real, y, 0.0)

        if skip:
            y = y + h                                        # dims match by config

        if use_ln:
            # Uncentered variance: only plain sums over y, so zero padded
            # lanes contribute nothing; zero-padded gamma/beta re-zero them.
            inv_d = 1.0 / float(d_out_real)
            mean = jnp.sum(y, axis=-1, keepdims=True) * inv_d
            var = jnp.sum(y * y, axis=-1, keepdims=True) * inv_d - mean * mean
            y = (y - mean) * jax.lax.rsqrt(var + eps)
            y = y * slab_l[1:2, :n_pad] + slab_l[2:3, :n_pad]

        h = y                                                # stays on-chip

    o_ref[...] = h.astype(o_ref.dtype)


# ---------------------------------------------------------------------------
# wrapper: per-layer lane-dense padding, packed bias slab, batch tiling
# ---------------------------------------------------------------------------
def multilayer_ffn_forward(x, layers, *, activation="relu", eps=1e-5,
                           weight_dtype=jnp.bfloat16, tm_max=512):
    m, d_in0 = x.shape
    L = len(layers)
    assert d_in0 == layers[0]["w"].shape[0]
    for l in range(L - 1):
        assert layers[l]["w"].shape[1] == layers[l + 1]["w"].shape[0]
    d_out_final = layers[-1]["w"].shape[1]

    # Per-layer lane-dense padding (NOT global max): layer l consumes k_pad_l
    # lanes and produces n_pad_l lanes; chained dims guarantee n_pad_l == k_pad_{l+1}.
    k_pads = [_round_up(lyr["w"].shape[0], 128) for lyr in layers]
    n_pads = [_round_up(lyr["w"].shape[1], 128) for lyr in layers]
    k_pad0 = k_pads[0]
    out_pad = n_pads[-1]                  # output only needs the last layer's lanes
    b_pad = max(n_pads)

    # Per-layer weights, padded to their own (K,N), stored in bf16 for the MXU.
    w_list = [_pad2(lyr["w"], k_pads[l], n_pads[l]).astype(weight_dtype)
              for l, lyr in enumerate(layers)]

    # bias / gamma / beta packed into one (L, 8, b_pad) f32 slab (rows 0/1/2).
    slab = jnp.zeros((L, 8, b_pad), jnp.float32)
    for l, lyr in enumerate(layers):
        d_out = lyr["w"].shape[1]
        slab = slab.at[l, 0, :d_out].set(lyr["b"].reshape(-1))
        slab = slab.at[l, 1, :d_out].set(lyr["gamma"].reshape(-1))
        slab = slab.at[l, 2, :d_out].set(lyr["beta"].reshape(-1))

    layer_cfg = tuple(
        (bool(lyr["use_layernorm"]), bool(lyr["skip_connection"]),
         int(lyr["w"].shape[1]), int(n_pads[l]))
        for l, lyr in enumerate(layers))

    # Batch tiling: multiple of 8, grid-aware so the pipeline / 2 TCs have work.
    tm = _choose_tm(m, tm_max=tm_max)
    m_pad = _round_up(m, tm)
    x_p = jnp.pad(x, ((0, m_pad - m), (0, k_pad0 - d_in0)))

    kernel = functools.partial(
        _fused_ffn_kernel, layer_cfg=layer_cfg, activation=activation, eps=eps)

    # ---------------- VMEM budget (bf16 weights, single-buffered params) -----
    w_bytes = sum(k_pads[l] * n_pads[l] for l in range(L)) * jnp.dtype(weight_dtype).itemsize
    slab_bytes = L * 8 * b_pad * 4
    io_bytes = (2 * tm * k_pad0 + 2 * tm * out_pad) * x.dtype.itemsize
    live_bytes = 4 * tm * max(n_pads) * 4          # f32 intermediates of the unrolled loop
    needed = w_bytes + slab_bytes + io_bytes + live_bytes

    cp_kwargs = dict(dimension_semantics=("parallel",))
    budget = int(needed * 3 // 2)
    if budget > (16 << 20):                        # v5e scoped-VMEM default is 16 MiB
        try:
            vmem_cap = int(pltpu.get_tpu_info().vmem_capacity_bytes)
        except Exception:                          # noqa: BLE001 - conservative fallback
            vmem_cap = 64 << 20                    # v7x per-TC physical VMEM
        cp_kwargs["vmem_limit_bytes"] = int(min(budget, vmem_cap * 3 // 4))
        # TODO(synk): if the bf16 single-buffered weight set exceeds ~0.75*VMEM
        # (hits ~48 MiB on v7x, ~96 MiB on v5e/v6e), tile the weight K/N dims
        # on extra grid axes instead of keeping them fully resident.

    # ---------------- BlockSpecs ---------------------------------------------
    def _build_in_specs(single_buffer_params):
        specs = [pl.BlockSpec((tm, k_pad0), lambda i: (i, 0))]          # x tile
        resident_shapes = [(k_pads[l], n_pads[l]) for l in range(L)]    # weights
        resident_shapes.append((L, 8, b_pad))                           # bias slab
        for shp in resident_shapes:
            idx = _const_index_map(len(shp))
            spec = None
            if single_buffer_params and hasattr(pl, "Buffered"):
                try:
                    # Constant block index -> double-buffering buys nothing;
                    # single-buffer halves resident parameter VMEM.
                    spec = pl.BlockSpec(shp, idx, pipeline_mode=pl.Buffered(1))
                except TypeError:
                    spec = None
            if spec is None:
                spec = pl.BlockSpec(shp, idx)
            specs.append(spec)
        return specs

    out_spec = pl.BlockSpec((tm, out_pad), lambda i: (i, 0))

    def _run(single_buffer_params):
        out = pl.pallas_call(
            kernel,
            out_shape=jax.ShapeDtypeStruct((m_pad, out_pad), x.dtype),
            grid_spec=pltpu.PrefetchScalarGridSpec(
                num_scalar_prefetch=0,
                grid=(m_pad // tm,),
                in_specs=_build_in_specs(single_buffer_params),
                out_specs=out_spec,
            ),
            compiler_params=pltpu.CompilerParams(**cp_kwargs),
        )(x_p, *w_list, slab)
        return jax.block_until_ready(out)

    try:
        out_p = _run(True)
    except Exception:                              # noqa: BLE001
        # Fallback: default (double-buffered) resident params if Buffered(1)
        # is not supported by this Pallas build.
        out_p = _run(False)

    return out_p[:m, :d_out_final]


# ---------------------------------------------------------------------------
# Parameter construction mirroring MultiLayerFeedForwardNN.__init__
# ---------------------------------------------------------------------------
def _xavier_uniform(key, d_in, d_out):
    # nn.init.xavier_uniform_ on weight [out, in]; gain = 1 (symmetric in dims).
    limit = math.sqrt(6.0 / (d_in + d_out))
    # stored already transposed to [in, out] for the kernel layout
    return jax.random.uniform(key, (d_in, d_out), jnp.float32, -limit, limit)


def _linear_bias(key, d_in, d_out):
    # PyTorch nn.Linear default bias init: U(-1/sqrt(in), 1/sqrt(in))
    bound = 1.0 / math.sqrt(d_in)
    return jax.random.uniform(key, (1, d_out), jnp.float32, -bound, bound)


def make_multilayer_ffn_params(key, input_dim, output_dim, num_hidden_layers,
                               hidden_dim, use_layernormalize, skip_connection):
    """Returns a list of per-layer dicts matching the PyTorch module layout."""
    layers = []

    def add_layer(k, d_in, d_out, use_ln, skip):
        k_w, k_b = jax.random.split(k)
        layers.append(dict(
            w=_xavier_uniform(k_w, d_in, d_out),
            b=_linear_bias(k_b, d_in, d_out),
            gamma=jnp.ones((1, d_out), jnp.float32),
            beta=jnp.zeros((1, d_out), jnp.float32),
            use_layernorm=use_ln,
            # skip only legal when dims match (mirrors SingleFeedForwardNN)
            skip_connection=bool(skip and d_in == d_out),
        ))

    if num_hidden_layers <= 0:
        key, k0 = jax.random.split(key)
        add_layer(k0, input_dim, output_dim, False, False)
    else:
        key, k0 = jax.random.split(key)
        add_layer(k0, input_dim, hidden_dim, use_layernormalize, skip_connection)
        for _ in range(num_hidden_layers - 1):
            key, ki = jax.random.split(key)
            add_layer(ki, hidden_dim, hidden_dim, use_layernormalize,
                      skip_connection)
        key, kl = jax.random.split(key)
        add_layer(kl, hidden_dim, output_dim, False, False)
    return layers


# ---------------------------------------------------------------------------
# Pure-JAX reference (emulates the kernel's matmul dtype for tight tolerances)
# ---------------------------------------------------------------------------
def _ref_forward(x, layers, activation="relu", eps=1e-5,
                 weight_dtype=jnp.float32):
    out = x
    for lyr in layers:
        w = lyr["w"].astype(weight_dtype).astype(jnp.float32)
        h = out.astype(weight_dtype).astype(jnp.float32)
        y = jnp.matmul(h, w, precision=jax.lax.Precision.HIGHEST) + lyr["b"]
        y = _apply_activation(y, activation)
        if lyr["skip_connection"]:
            y = y + out
        if lyr["use_layernorm"]:
            mu = jnp.mean(y, -1, keepdims=True)
            var = jnp.mean((y - mu) ** 2, -1, keepdims=True)
            y = (y - mu) * jax.lax.rsqrt(var + eps) * lyr["gamma"] + lyr["beta"]
        out = y
    return out


if __name__ == "__main__":
    batch = 8
    key = jax.random.PRNGKey(0)
    k_x, k_p1, k_p2, k_p3 = jax.random.split(key, 4)

    x = jax.random.normal(k_x, (batch, 32), jnp.float32)

    # 1) module defaults: relu + layernorm, 2 hidden layers (32 -> 64 -> 64 -> 32),
    #    bf16 weights on the MXU.
    layers1 = make_multilayer_ffn_params(
        k_p1, input_dim=32, output_dim=32, num_hidden_layers=2, hidden_dim=64,
        use_layernormalize=True, skip_connection=False)
    out1 = multilayer_ffn_forward(x, layers1, activation="relu",
                                  weight_dtype=jnp.bfloat16)
    ref1 = _ref_forward(x, layers1, activation="relu",
                        weight_dtype=jnp.bfloat16)
    assert out1.shape == (batch, 32)
    assert jnp.max(jnp.abs(out1 - ref1)) < 2e-3, "relu/layernorm mismatch"

    # 2) sigmoid + skip connections + layernorm (32 -> 32 -> 32 -> 16), bf16.
    layers2 = make_multilayer_ffn_params(
        k_p2, input_dim=32, output_dim=16, num_hidden_layers=2, hidden_dim=32,
        use_layernormalize=True, skip_connection=True)
    out2 = multilayer_ffn_forward(x, layers2, activation="sigmoid",
                                  weight_dtype=jnp.bfloat16)
    ref2 = _ref_forward(x, layers2, activation="sigmoid",
                        weight_dtype=jnp.bfloat16)
    assert out2.shape == (batch, 16)
    assert jnp.max(jnp.abs(out2 - ref2)) < 2e-3, "sigmoid/skip mismatch"

    # 3) linear-only network (num_hidden_layers=0), tanh, strict f32 weight path.
    layers3 = make_multilayer_ffn_params(
        k_p3, input_dim=32, output_dim=48, num_hidden_layers=0, hidden_dim=-1,
        use_layernormalize=True, skip_connection=False)
    out3 = multilayer_ffn_forward(x, layers3, activation="tanh",
                                  weight_dtype=jnp.float32)
    ref3 = _ref_forward(x, layers3, activation="tanh",
                        weight_dtype=jnp.float32)
    assert out3.shape == (batch, 48)
    assert jnp.max(jnp.abs(out3 - ref3)) < 2e-4, "tanh/linear-only mismatch"

    print("KERNEL_OK")
</pallas_src>

<mosaic_0001>
module attributes {stable_mosaic.version = 11 : i64} {
  func.func @_fused_ffn_kernel(%arg0: i32, %arg1: memref<8x128xf32, #tpu.memory_space<vmem>>, %arg2: memref<128x128xbf16, #tpu.memory_space<vmem>>, %arg3: memref<128x128xbf16, #tpu.memory_space<vmem>>, %arg4: memref<128x128xbf16, #tpu.memory_space<vmem>>, %arg5: memref<3x8x128xf32, #tpu.memory_space<vmem>>, %arg6: memref<8x128xf32, #tpu.memory_space<vmem>>) attributes {dimension_semantics = [#tpu.dimension_semantics<parallel>], iteration_bounds = array<i64: 1>, scalar_prefetch = 0 : i64, scratch_operands = 0 : i64, tpu.core_type = #tpu.core_type<tc>, window_params = [{transform_indices = @transform_0, window_bounds = array<i64: 8, 128>}, {pipeline_mode = #tpu.pipeline_mode<synchronous>, transform_indices = @transform_1, window_bounds = array<i64: 128, 128>}, {pipeline_mode = #tpu.pipeline_mode<synchronous>, transform_indices = @transform_2, window_bounds = array<i64: 128, 128>}, {pipeline_mode = #tpu.pipeline_mode<synchronous>, transform_indices = @transform_3, window_bounds = array<i64: 128, 128>}, {pipeline_mode = #tpu.pipeline_mode<synchronous>, transform_indices = @transform_4, window_bounds = array<i64: 3, 8, 128>}, {transform_indices = @transform_5, window_bounds = array<i64: 8, 128>}]} {
    %c0 = arith.constant 0 : index
    %c0_0 = arith.constant 0 : index
    %0 = vector.load %arg1[%c0, %c0_0] : memref<8x128xf32, #tpu.memory_space<vmem>>, vector<8x128xf32>
    %c0_1 = arith.constant 0 : index
    %c0_2 = arith.constant 0 : index
    %1 = vector.load %arg2[%c0_1, %c0_2] : memref<128x128xbf16, #tpu.memory_space<vmem>>, vector<128x128xbf16>
    %2 = arith.truncf %0 : vector<8x128xf32> to vector<8x128xbf16>
    %cst = arith.constant dense<0.000000e+00> : vector<8x128xf32>
    %3 = tpu.matmul %2, %1, %cst {dimension_numbers = #tpu.dot_dimension_numbers<[1], [0], [0], [1], [0, 0, 1, 1], [], []>} : vector<8x128xbf16>, vector<128x128xbf16>, vector<8x128xf32> -> vector<8x128xf32>
    %c0_3 = arith.constant 0 : index
    %c0_4 = arith.constant 0 : index
    %c0_5 = arith.constant 0 : index
    %4 = vector.load %arg5[%c0_3, %c0_4, %c0_5] : memref<3x8x128xf32, #tpu.memory_space<vmem>>, vector<1x8x128xf32>
    %5 = vector.shape_cast %4 : vector<1x8x128xf32> to vector<8x128xf32>
    %6 = vector.extract_strided_slice %5 {offsets = [0, 0], sizes = [1, 128], strides = [1, 1]} : vector<8x128xf32> to vector<1x128xf32>
    %7 = vector.broadcast %6 : vector<1x128xf32> to vector<8x128xf32>
    %8 = arith.addf %3, %7 : vector<8x128xf32>
    %cst_6 = arith.constant 0.000000e+00 : f32
    %9 = vector.broadcast %cst_6 : f32 to vector<8x128xf32>
    %10 = arith.maximumf %8, %9 : vector<8x128xf32>
    %cst_7 = arith.constant dense<0.000000e+00> : vector<8xf32>
    %11 = vector.multi_reduction <add>, %10, %cst_7 [1] : vector<8x128xf32> to vector<8xf32>
    %12 = vector.shape_cast %11 : vector<8xf32> to vector<8x1xf32>
    %cst_8 = arith.constant 1.562500e-02 : f32
    %13 = vector.broadcast %cst_8 : f32 to vector<8x1xf32>
    %14 = arith.mulf %12, %13 : vector<8x1xf32>
    %15 = arith.mulf %10, %10 : vector<8x128xf32>
    %cst_9 = arith.constant dense<0.000000e+00> : vector<8xf32>
    %16 = vector.multi_reduction <add>, %15, %cst_9 [1] : vector<8x128xf32> to vector<8xf32>
    %17 = vector.shape_cast %16 : vector<8xf32> to vector<8x1xf32>
    %cst_10 = arith.constant 1.562500e-02 : f32
    %18 = vector.broadcast %cst_10 : f32 to vector<8x1xf32>
    %19 = arith.mulf %17, %18 : vector<8x1xf32>
    %20 = arith.mulf %14, %14 : vector<8x1xf32>
    %21 = arith.subf %19, %20 : vector<8x1xf32>
    %22 = vector.broadcast %14 : vector<8x1xf32> to vector<8x128xf32>
    %23 = arith.subf %10, %22 : vector<8x128xf32>
    %cst_11 = arith.constant 9.99999974E-6 : f32
    %24 = vector.broadcast %cst_11 : f32 to vector<8x1xf32>
    %25 = arith.addf %21, %24 : vector<8x1xf32>
    %26 = math.rsqrt %25 : vector<8x1xf32>
    %27 = vector.broadcast %26 : vector<8x1xf32> to vector<8x128xf32>
    %28 = arith.mulf %23, %27 : vector<8x128xf32>
    %29 = vector.extract_strided_slice %5 {offsets = [1, 0], sizes = [1, 128], strides = [1, 1]} : vector<8x128xf32> to vector<1x128xf32>
    %30 = vector.broadcast %29 : vector<1x128xf32> to vector<8x128xf32>
    %31 = arith.mulf %28, %30 : vector<8x128xf32>
    %32 = vector.extract_strided_slice %5 {offsets = [2, 0], sizes = [1, 128], strides = [1, 1]} : vector<8x128xf32> to vector<1x128xf32>
    %33 = vector.broadcast %32 : vector<1x128xf32> to vector<8x128xf32>
    %34 = arith.addf %31, %33 : vector<8x128xf32>
    %c0_12 = arith.constant 0 : index
    %c0_13 = arith.constant 0 : index
    %35 = vector.load %arg3[%c0_12, %c0_13] : memref<128x128xbf16, #tpu.memory_space<vmem>>, vector<128x128xbf16>
    %36 = arith.truncf %34 : vector<8x128xf32> to vector<8x128xbf16>
    %cst_14 = arith.constant dense<0.000000e+00> : vector<8x128xf32>
    %37 = tpu.matmul %36, %35, %cst_14 {dimension_numbers = #tpu.dot_dimension_numbers<[1], [0], [0], [1], [0, 0, 1, 1], [], []>} : vector<8x128xbf16>, vector<128x128xbf16>, vector<8x128xf32> -> vector<8x128xf32>
    %c1 = arith.constant 1 : index
    %c0_15 = arith.constant 0 : index
    %c0_16 = arith.constant 0 : index
    %38 = vector.load %arg5[%c1, %c0_15, %c0_16] : memref<3x8x128xf32, #tpu.memory_space<vmem>>, vector<1x8x128xf32>
    %39 = vector.shape_cast %38 : vector<1x8x128xf32> to vector<8x128xf32>
    %40 = vector.extract_strided_slice %39 {offsets = [0, 0], sizes = [1, 128], strides = [1, 1]} : vector<8x128xf32> to vector<1x128xf32>
    %41 = vector.broadcast %40 : vector<1x128xf32> to vector<8x128xf32>
    %42 = arith.addf %37, %41 : vector<8x128xf32>
    %cst_17 = arith.constant 0.000000e+00 : f32
    %43 = vector.broadcast %cst_17 : f32 to vector<8x128xf32>
    %44 = arith.maximumf %42, %43 : vector<8x128xf32>
    %cst_18 = arith.constant dense<0.000000e+00> : vector<8xf32>
    %45 = vector.multi_reduction <add>, %44, %cst_18 [1] : vector<8x128xf32> to vector<8xf32>
    %46 = vector.shape_cast %45 : vector<8xf32> to vector<8x1xf32>
    %cst_19 = arith.constant 1.562500e-02 : f32
    %47 = vector.broadcast %cst_19 : f32 to vector<8x1xf32>
    %48 = arith.mulf %46, %47 : vector<8x1xf32>
    %49 = arith.mulf %44, %44 : vector<8x128xf32>
    %cst_20 = arith.constant dense<0.000000e+00> : vector<8xf32>
    %50 = vector.multi_reduction <add>, %49, %cst_20 [1] : vector<8x128xf32> to vector<8xf32>
    %51 = vector.shape_cast %50 : vector<8xf32> to vector<8x1xf32>
    %cst_21 = arith.constant 1.562500e-02 : f32
    %52 = vector.broadcast %cst_21 : f32 to vector<8x1xf32>
    %53 = arith.mulf %51, %52 : vector<8x1xf32>
    %54 = arith.mulf %48, %48 : vector<8x1xf32>
    %55 = arith.subf %53, %54 : vector<8x1xf32>
    %56 = vector.broadcast %48 : vector<8x1xf32> to vector<8x128xf32>
    %57 = arith.subf %44, %56 : vector<8x128xf32>
    %cst_22 = arith.constant 9.99999974E-6 : f32
    %58 = vector.broadcast %cst_22 : f32 to vector<8x1xf32>
    %59 = arith.addf %55, %58 : vector<8x1xf32>
    %60 = math.rsqrt %59 : vector<8x1xf32>
    %61 = vector.broadcast %60 : vector<8x1xf32> to vector<8x128xf32>
    %62 = arith.mulf %57, %61 : vector<8x128xf32>
    %63 = vector.extract_strided_slice %39 {offsets = [1, 0], sizes = [1, 128], strides = [1, 1]} : vector<8x128xf32> to vector<1x128xf32>
    %64 = vector.broadcast %63 : vector<1x128xf32> to vector<8x128xf32>
    %65 = arith.mulf %62, %64 : vector<8x128xf32>
    %66 = vector.extract_strided_slice %39 {offsets = [2, 0], sizes = [1, 128], strides = [1, 1]} : vector<8x128xf32> to vector<1x128xf32>
    %67 = vector.broadcast %66 : vector<1x128xf32> to vector<8x128xf32>
    %68 = arith.addf %65, %67 : vector<8x128xf32>
    %c0_23 = arith.constant 0 : index
    %c0_24 = arith.constant 0 : index
    %69 = vector.load %arg4[%c0_23, %c0_24] : memref<128x128xbf16, #tpu.memory_space<vmem>>, vector<128x128xbf16>
    %70 = arith.truncf %68 : vector<8x128xf32> to vector<8x128xbf16>
    %cst_25 = arith.constant dense<0.000000e+00> : vector<8x128xf32>
    %71 = tpu.matmul %70, %69, %cst_25 {dimension_numbers = #tpu.dot_dimension_numbers<[1], [0], [0], [1], [0, 0, 1, 1], [], []>} : vector<8x128xbf16>, vector<128x128xbf16>, vector<8x128xf32> -> vector<8x128xf32>
    %c2 = arith.constant 2 : index
    %c0_26 = arith.constant 0 : index
    %c0_27 = arith.constant 0 : index
    %72 = vector.load %arg5[%c2, %c0_26, %c0_27] : memref<3x8x128xf32, #tpu.memory_space<vmem>>, vector<1x8x128xf32>
    %73 = vector.shape_cast %72 : vector<1x8x128xf32> to vector<8x128xf32>
    %74 = vector.extract_strided_slice %73 {offsets = [0, 0], sizes = [1, 128], strides = [1, 1]} : vector<8x128xf32> to vector<1x128xf32>
    %75 = vector.broadcast %74 : vector<1x128xf32> to vector<8x128xf32>
    %76 = arith.addf %71, %75 : vector<8x128xf32>
    %cst_28 = arith.constant 0.000000e+00 : f32
    %77 = vector.broadcast %cst_28 : f32 to vector<8x128xf32>
    %78 = arith.maximumf %76, %77 : vector<8x128xf32>
    %c0_29 = arith.constant 0 : index
    %c0_30 = arith.constant 0 : index
    %79 = vector.load %arg6[%c0_29, %c0_30] : memref<8x128xf32, #tpu.memory_space<vmem>>, vector<8x128xf32>
    tpu.vector_store %arg6[%c0_29, %c0_30], %78 {strides = array<i32>} : memref<8x128xf32, #tpu.memory_space<vmem>>, vector<8x128xf32>,
    return
  }
  func.func @transform_0(%arg0: i32) -> (i32, i32) {
    %c0_i32 = arith.constant 0 : i32
    %c0_i32_0 = arith.constant 0 : i32
    return %arg0, %c0_i32 : i32, i32
  }
  func.func @transform_1(%arg0: i32) -> (i32, i32) {
    %c0_i32 = arith.constant 0 : i32
    %c0_i32_0 = arith.constant 0 : i32
    %c0_i32_1 = arith.constant 0 : i32
    return %c0_i32, %c0_i32_0 : i32, i32
  }
  func.func @transform_2(%arg0: i32) -> (i32, i32) {
    %c0_i32 = arith.constant 0 : i32
    %c0_i32_0 = arith.constant 0 : i32
    %c0_i32_1 = arith.constant 0 : i32
    return %c0_i32, %c0_i32_0 : i32, i32
  }
  func.func @transform_3(%arg0: i32) -> (i32, i32) {
    %c0_i32 = arith.constant 0 : i32
    %c0_i32_0 = arith.constant 0 : i32
    %c0_i32_1 = arith.constant 0 : i32
    return %c0_i32, %c0_i32_0 : i32, i32
  }
  func.func @transform_4(%arg0: i32) -> (i32, i32, i32) {
    %c0_i32 = arith.constant 0 : i32
    %c0_i32_0 = arith.constant 0 : i32
    %c0_i32_1 = arith.constant 0 : i32
    %c0_i32_2 = arith.constant 0 : i32
    return %c0_i32, %c0_i32_0, %c0_i32_1 : i32, i32, i32
  }
  func.func @transform_5(%arg0: i32) -> (i32, i32) {
    %c0_i32 = arith.constant 0 : i32
    %c0_i32_0 = arith.constant 0 : i32
    return %arg0, %c0_i32 : i32, i32
  }
}

module attributes {stable_mosaic.version = 11 : i64} {
  func.func @_fused_ffn_kernel(%arg0: i32, %arg1: memref<8x128xf32, #tpu.memory_space<vmem>>, %arg2: memref<128x128xbf16, #tpu.memory_space<vmem>>, %arg3: memref<128x128xbf16, #tpu.memory_space<vmem>>, %arg4: memref<128x128xbf16, #tpu.memory_space<vmem>>, %arg5: memref<3x8x128xf32, #tpu.memory_space<vmem>>, %arg6: memref<8x128xf32, #tpu.memory_space<vmem>>) attributes {dimension_semantics = [#tpu.dimension_semantics<parallel>], iteration_bounds = array<i64: 1>, scalar_prefetch = 0 : i64, scratch_operands = 0 : i64, tpu.core_type = #tpu.core_type<tc>, window_params = [{transform_indices = @transform_0, window_bounds = array<i64: 8, 128>}, {pipeline_mode = #tpu.pipeline_mode<synchronous>, transform_indices = @transform_1, window_bounds = array<i64: 128, 128>}, {pipeline_mode = #tpu.pipeline_mode<synchronous>, transform_indices = @transform_2, window_bounds = array<i64: 128, 128>}, {pipeline_mode = #tpu.pipeline_mode<synchronous>, transform_indices = @transform_3, window_bounds = array<i64: 128, 128>}, {pipeline_mode = #tpu.pipeline_mode<synchronous>, transform_indices = @transform_4, window_bounds = array<i64: 3, 8, 128>}, {transform_indices = @transform_5, window_bounds = array<i64: 8, 128>}]} {
    %c0 = arith.constant 0 : index
    %c0_0 = arith.constant 0 : index
    %0 = vector.load %arg1[%c0, %c0_0] : memref<8x128xf32, #tpu.memory_space<vmem>>, vector<8x128xf32>
    %c0_1 = arith.constant 0 : index
    %c0_2 = arith.constant 0 : index
    %1 = vector.load %arg2[%c0_1, %c0_2] : memref<128x128xbf16, #tpu.memory_space<vmem>>, vector<128x128xbf16>
    %2 = arith.truncf %0 : vector<8x128xf32> to vector<8x128xbf16>
    %cst = arith.constant dense<0.000000e+00> : vector<8x128xf32>
    %3 = tpu.matmul %2, %1, %cst {dimension_numbers = #tpu.dot_dimension_numbers<[1], [0], [0], [1], [0, 0, 1, 1], [], []>} : vector<8x128xbf16>, vector<128x128xbf16>, vector<8x128xf32> -> vector<8x128xf32>
    %c0_3 = arith.constant 0 : index
    %c0_4 = arith.constant 0 : index
    %c0_5 = arith.constant 0 : index
    %4 = vector.load %arg5[%c0_3, %c0_4, %c0_5] : memref<3x8x128xf32, #tpu.memory_space<vmem>>, vector<1x8x128xf32>
    %5 = vector.shape_cast %4 : vector<1x8x128xf32> to vector<8x128xf32>
    %6 = vector.extract_strided_slice %5 {offsets = [0, 0], sizes = [1, 128], strides = [1, 1]} : vector<8x128xf32> to vector<1x128xf32>
    %7 = vector.broadcast %6 : vector<1x128xf32> to vector<8x128xf32>
    %8 = arith.addf %3, %7 : vector<8x128xf32>
    %cst_6 = arith.constant 0.000000e+00 : f32
    %9 = vector.broadcast %cst_6 : f32 to vector<8x128xf32>
    %10 = arith.maximumf %8, %9 : vector<8x128xf32>
    %cst_7 = arith.constant dense<0.000000e+00> : vector<8xf32>
    %11 = vector.multi_reduction <add>, %10, %cst_7 [1] : vector<8x128xf32> to vector<8xf32>
    %12 = vector.shape_cast %11 : vector<8xf32> to vector<8x1xf32>
    %cst_8 = arith.constant 1.562500e-02 : f32
    %13 = vector.broadcast %cst_8 : f32 to vector<8x1xf32>
    %14 = arith.mulf %12, %13 : vector<8x1xf32>
    %15 = arith.mulf %10, %10 : vector<8x128xf32>
    %cst_9 = arith.constant dense<0.000000e+00> : vector<8xf32>
    %16 = vector.multi_reduction <add>, %15, %cst_9 [1] : vector<8x128xf32> to vector<8xf32>
    %17 = vector.shape_cast %16 : vector<8xf32> to vector<8x1xf32>
    %cst_10 = arith.constant 1.562500e-02 : f32
    %18 = vector.broadcast %cst_10 : f32 to vector<8x1xf32>
    %19 = arith.mulf %17, %18 : vector<8x1xf32>
    %20 = arith.mulf %14, %14 : vector<8x1xf32>
    %21 = arith.subf %19, %20 : vector<8x1xf32>
    %22 = vector.broadcast %14 : vector<8x1xf32> to vector<8x128xf32>
    %23 = arith.subf %10, %22 : vector<8x128xf32>
    %cst_11 = arith.constant 9.99999974E-6 : f32
    %24 = vector.broadcast %cst_11 : f32 to vector<8x1xf32>
    %25 = arith.addf %21, %24 : vector<8x1xf32>
    %26 = math.rsqrt %25 : vector<8x1xf32>
    %27 = vector.broadcast %26 : vector<8x1xf32> to vector<8x128xf32>
    %28 = arith.mulf %23, %27 : vector<8x128xf32>
    %29 = vector.extract_strided_slice %5 {offsets = [1, 0], sizes = [1, 128], strides = [1, 1]} : vector<8x128xf32> to vector<1x128xf32>
    %30 = vector.broadcast %29 : vector<1x128xf32> to vector<8x128xf32>
    %31 = arith.mulf %28, %30 : vector<8x128xf32>
    %32 = vector.extract_strided_slice %5 {offsets = [2, 0], sizes = [1, 128], strides = [1, 1]} : vector<8x128xf32> to vector<1x128xf32>
    %33 = vector.broadcast %32 : vector<1x128xf32> to vector<8x128xf32>
    %34 = arith.addf %31, %33 : vector<8x128xf32>
    %c0_12 = arith.constant 0 : index
    %c0_13 = arith.constant 0 : index
    %35 = vector.load %arg3[%c0_12, %c0_13] : memref<128x128xbf16, #tpu.memory_space<vmem>>, vector<128x128xbf16>
    %36 = arith.truncf %34 : vector<8x128xf32> to vector<8x128xbf16>
    %cst_14 = arith.constant dense<0.000000e+00> : vector<8x128xf32>
    %37 = tpu.matmul %36, %35, %cst_14 {dimension_numbers = #tpu.dot_dimension_numbers<[1], [0], [0], [1], [0, 0, 1, 1], [], []>} : vector<8x128xbf16>, vector<128x128xbf16>, vector<8x128xf32> -> vector<8x128xf32>
    %c1 = arith.constant 1 : index
    %c0_15 = arith.constant 0 : index
    %c0_16 = arith.constant 0 : index
    %38 = vector.load %arg5[%c1, %c0_15, %c0_16] : memref<3x8x128xf32, #tpu.memory_space<vmem>>, vector<1x8x128xf32>
    %39 = vector.shape_cast %38 : vector<1x8x128xf32> to vector<8x128xf32>
    %40 = vector.extract_strided_slice %39 {offsets = [0, 0], sizes = [1, 128], strides = [1, 1]} : vector<8x128xf32> to vector<1x128xf32>
    %41 = vector.broadcast %40 : vector<1x128xf32> to vector<8x128xf32>
    %42 = arith.addf %37, %41 : vector<8x128xf32>
    %cst_17 = arith.constant 0.000000e+00 : f32
    %43 = vector.broadcast %cst_17 : f32 to vector<8x128xf32>
    %44 = arith.maximumf %42, %43 : vector<8x128xf32>
    %cst_18 = arith.constant dense<0.000000e+00> : vector<8xf32>
    %45 = vector.multi_reduction <add>, %44, %cst_18 [1] : vector<8x128xf32> to vector<8xf32>
    %46 = vector.shape_cast %45 : vector<8xf32> to vector<8x1xf32>
    %cst_19 = arith.constant 1.562500e-02 : f32
    %47 = vector.broadcast %cst_19 : f32 to vector<8x1xf32>
    %48 = arith.mulf %46, %47 : vector<8x1xf32>
    %49 = arith.mulf %44, %44 : vector<8x128xf32>
    %cst_20 = arith.constant dense<0.000000e+00> : vector<8xf32>
    %50 = vector.multi_reduction <add>, %49, %cst_20 [1] : vector<8x128xf32> to vector<8xf32>
    %51 = vector.shape_cast %50 : vector<8xf32> to vector<8x1xf32>
    %cst_21 = arith.constant 1.562500e-02 : f32
    %52 = vector.broadcast %cst_21 : f32 to vector<8x1xf32>
    %53 = arith.mulf %51, %52 : vector<8x1xf32>
    %54 = arith.mulf %48, %48 : vector<8x1xf32>
    %55 = arith.subf %53, %54 : vector<8x1xf32>
    %56 = vector.broadcast %48 : vector<8x1xf32> to vector<8x128xf32>
    %57 = arith.subf %44, %56 : vector<8x128xf32>
    %cst_22 = arith.constant 9.99999974E-6 : f32
    %58 = vector.broadcast %cst_22 : f32 to vector<8x1xf32>
    %59 = arith.addf %55, %58 : vector<8x1xf32>
    %60 = math.rsqrt %59 : vector<8x1xf32>
    %61 = vector.broadcast %60 : vector<8x1xf32> to vector<8x128xf32>
    %62 = arith.mulf %57, %61 : vector<8x128xf32>
    %63 = vector.extract_strided_slice %39 {offsets = [1, 0], sizes = [1, 128], strides = [1, 1]} : vector<8x128xf32> to vector<1x128xf32>
    %64 = vector.broadcast %63 : vector<1x128xf32> to vector<8x128xf32>
    %65 = arith.mulf %62, %64 : vector<8x128xf32>
    %66 = vector.extract_strided_slice %39 {offsets = [2, 0], sizes = [1, 128], strides = [1, 1]} : vector<8x128xf32> to vector<1x128xf32>
    %67 = vector.broadcast %66 : vector<1x128xf32> to vector<8x128xf32>
    %68 = arith.addf %65, %67 : vector<8x128xf32>
    %c0_23 = arith.constant 0 : index
    %c0_24 = arith.constant 0 : index
    %69 = vector.load %arg4[%c0_23, %c0_24] : memref<128x128xbf16, #tpu.memory_space<vmem>>, vector<128x128xbf16>
    %70 = arith.truncf %68 : vector<8x128xf32> to vector<8x128xbf16>
    %cst_25 = arith.constant dense<0.000000e+00> : vector<8x128xf32>
    %71 = tpu.matmul %70, %69, %cst_25 {dimension_numbers = #tpu.dot_dimension_numbers<[1], [0], [0], [1], [0, 0, 1, 1], [], []>} : vector<8x128xbf16>, vector<128x128xbf16>, vector<8x128xf32> -> vector<8x128xf32>
    %c2 = arith.constant 2 : index
    %c0_26 = arith.constant 0 : index
    %c0_27 = arith.constant 0 : index
    %72 = vector.load %arg5[%c2, %c0_26, %c0_27] : memref<3x8x128xf32, #tpu.memory_space<vmem>>, vector<1x8x128xf32>
    %73 = vector.shape_cast %72 : vector<1x8x128xf32> to vector<8x128xf32>
    %74 = vector.extract_strided_slice %73 {offsets = [0, 0], sizes = [1, 128], strides = [1, 1]} : vector<8x128xf32> to vector<1x128xf32>
    %75 = vector.broadcast %74 : vector<1x128xf32> to vector<8x128xf32>
    %76 = arith.addf %71, %75 : vector<8x128xf32>
    %cst_28 = arith.constant 0.000000e+00 : f32
    %77 = vector.broadcast %cst_28 : f32 to vector<8x128xf32>
    %78 = arith.maximumf %76, %77 : vector<8x128xf32>
    %c0_29 = arith.constant 0 : index
    %c0_30 = arith.constant 0 : index
    %79 = vector.load %arg6[%c0_29, %c0_30] : memref<8x128xf32, #tpu.memory_space<vmem>>, vector<8x128xf32>
    tpu.vector_store %arg6[%c0_29, %c0_30], %78 {strides = array<i32>} : memref<8x128xf32, #tpu.memory_space<vmem>>, vector<8x128xf32>,
    return
  }
  func.func @transform_0(%arg0: i32) -> (i32, i32) {
    %c0_i32 = arith.constant 0 : i32
    %c0_i32_0 = arith.constant 0 : i32
    return %arg0, %c0_i32 : i32, i32
  }
  func.func @transform_1(%arg0: i32) -> (i32, i32) {
    %c0_i32 = arith.constant 0 : i32
    %c0_i32_0 = arith.constant 0 : i32
    %c0_i32_1 = arith.constant 0 : i32
    return %c0_i32, %c0_i32_0 : i32, i32
  }
  func.func @transform_2(%arg0: i32) -> (i32, i32) {
    %c0_i32 = arith.constant 0 : i32
    %c0_i32_0 = arith.constant 0 : i32
    %c0_i32_1 = arith.constant 0 : i32
    return %c0_i32, %c0_i32_0 : i32, i32
  }
  func.func @transform_3(%arg0: i32) -> (i32, i32) {
    %c0_i32 = arith.constant 0 : i32
    %c0_i32_0 = arith.constant 0 : i32
    %c0_i32_1 = arith.constant 0 : i32
    return %c0_i32, %c0_i32_0 : i32, i32
  }
  func.func @transform_4(%arg0: i32) -> (i32, i32, i32) {
    %c0_i32 = arith.constant 0 : i32
    %c0_i32_0 = arith.constant 0 : i32
    %c0_i32_1 = arith.constant 0 : i32
    %c0_i32_2 = arith.constant 0 : i32
    return %c0_i32, %c0_i32_0, %c0_i32_1 : i32, i32, i32
  }
  func.func @transform_5(%arg0: i32) -> (i32, i32) {
    %c0_i32 = arith.constant 0 : i32
    %c0_i32_0 = arith.constant 0 : i32
    return %arg0, %c0_i32 : i32, i32
  }
}

</mosaic_0001>

<bundles_post_ra>
// kernel: tpu_custom_call.1
= control target key start
LH: loop header
LB: loop body
LE: loop exit
PB: predicated region body
PF: predicated region fallthrough
CT: control target
= control target key end

     0   :  { %10 = vsyncpa [#allocation3], 0  ;;  %s759_s0 = inlined_call_operand.hbm [shape: f32[8,128], index: 0, kind: input, shape index: {}]   ;;  %s760_s1 = inlined_call_operand.hbm [shape: bf16[128,128], index: 1, kind: input, shape index: {}]   ;;  %s761_s2 = inlined_call_operand.hbm [shape: bf16[128,128], index: 2, kind: input, shape index: {}]   ;;  %s762_s3 = inlined_call_operand.hbm [shape: bf16[128,128], index: 3, kind: input, shape index: {}]   ;;  %s763_s4 = inlined_call_operand.hbm [shape: f32[3,8,128], index: 4, kind: input, shape index: {}]   ;;  %s764_s5 = inlined_call_operand.hbm [shape: f32[8,128], index: 5, kind: output, shape index: {}]  }
   0x1   :  { %11 = vsyncpa [#allocation6], 0 }
   0x2   :  { %12 = vsyncpa [#allocation9], 0  ;;  %s29_s20 = sshll.u32 %s760_s1, 4  ;;  %s30_s20 = int_to_ptr.hbm [resolvable:$true] %s29_s20 }
   0x3   :  { %13 = vsyncpa [#allocation4], 0  ;;  %s701_s21 = smov [#allocation5]   ;;  %s55_s25 = sshll.u32 %s762_s3, 4  ;;  %s56_s25 = int_to_ptr.hbm [resolvable:$true] %s55_s25 }
   0x4   :  { %s31_s22 = sshll.u32 %s701_s21, 4  ;;  %s702_s26 = smov 64   ;;  %s32_s22 = int_to_ptr.vmem [resolvable:$true] %s31_s22 }
   0x5   :  { %s703_s27 = smov 4   ;;  %s704_s28 = smov [#allocation8]  }
   0x6   :  { %37 = dma.hbm_to_vmem [thread:$0]  %s30_s20, 1024, %s32_s22, [#allocation6], %s702_s26, %s702_s26, %s703_s27  }
   0x7   :  { %s57_s29 = sshll.u32 %s704_s28, 4  ;;  %s19_s7 = sshll.u32 %s759_s0, 4  ;;  %s58_s29 = int_to_ptr.vmem [resolvable:$true] %s57_s29  ;;  %s20_s7 = int_to_ptr.hbm [resolvable:$true] %s19_s7 }
   0x8   :  { %63 = dma.hbm_to_vmem [thread:$0]  %s56_s25, 1024, %s58_s29, [#allocation9], %s702_s26, %s702_s26, %s703_s27  }
   0x9   :  { %s42_s9 = sshll.u32 %s761_s2, 4  ;;  %s705_s10 = smov [#allocation2]   ;;  %s43_s9 = int_to_ptr.hbm [resolvable:$true] %s42_s9 }
   0xa   :  { %s21_s11 = sshll.u32 %s705_s10, 4  ;;  %s706_s3 = smov [#allocation7]   ;;  %s22_s11 = int_to_ptr.vmem [resolvable:$true] %s21_s11 }
   0xb   :  { %24 = dma.hbm_to_vmem [thread:$0]  %s20_s7, 128, %s22_s11, [#allocation3]  }
   0xc   :  { %s44_s12 = sshll.u32 %s706_s3, 4  ;;  %s68_s15 = sshll.u32 %s763_s4, 4  ;;  %s45_s12 = int_to_ptr.vmem [resolvable:$true] %s44_s12  ;;  %s69_s15 = int_to_ptr.hbm [resolvable:$true] %s68_s15 }
   0xd   :  { %50 = dma.hbm_to_vmem [thread:$0]  %s43_s9, 1024, %s45_s12, [#allocation6], %s702_s26, %s702_s26, %s703_s27  }
   0xe   :  { %s707_s0 = smov [#allocation10]   ;;  %s708_s17 = smov 128  }
   0xf   :  { %s70_s16 = sshll.u32 %s707_s0, 4  ;;  %s709_s18 = smov 8   ;;  %s71_s16 = int_to_ptr.vmem [resolvable:$true] %s70_s16 }
  0x10   :  { %76 = dma.hbm_to_vmem [thread:$0]  %s69_s15, 384, %s71_s16, [#allocation9], %s708_s17, %s708_s17, %s709_s18  }
  0x11   :  { %693 = dma.done.wait [#allocation3], 128  }
  0x12   :  { %694 = vsyncadd [#allocation3], 4294967168 }
  0x13   :  { %695 = dma.done.wait [#allocation6], 2048  }
  0x14   :  { %696 = vsyncadd [#allocation6], 4294965248 }
  0x15   :  { %697 = dma.done.wait [#allocation9], 1408  }
  0x16   :  { %698 = vsyncadd [#allocation9], 4294965888  ;;  %v518_v0 = vld [vmem:[#allocation5 + $0x38] sm:$0xff]  ;;  %v517_v1 = vld [vmem:[#allocation5 + $0x30] sm:$0xff]  ;;  %s710_s2 = smov [#allocation11]   ;;  %s403_s21 = sshll.u32 %s764_s5, 4  ;;  %s404_s21 = int_to_ptr.hbm [resolvable:$true] %s403_s21 }
  0x17   :  { %165 = vmatpush.bf16.msra.mxu0 %v518_v0  ;;  %v516_v2 = vld [vmem:[#allocation5 + $0x28] sm:$0xff]  ;;  %v515_v3 = vld [vmem:[#allocation5 + $0x20] sm:$0xff]  ;;  %v514_v4 = vld [vmem:[#allocation5 + $0x18] sm:$0xff]  ;;  %s401_s4 = sshll.u32 %s710_s2, 4  ;;  %s402_s4 = int_to_ptr.vmem [resolvable:$true] %s401_s4 }
  0x18   :  { %v513_v5 = vld [vmem:[#allocation5 + $0x10] sm:$0xff]  ;;  %v512_v6 = vld [vmem:[#allocation5 + $0x8] sm:$0xff]  ;;  %v511_v7 = vld [vmem:[#allocation5] sm:$0xff] }
  0x19   :  { %v97_v8 = vld [vmem:[#allocation2] sm:$0xff]  ;;  %v115_v10 = vld [vmem:[#allocation10] sm:$0xff]  ;;  %v525_v18 = vld [vmem:[#allocation7 + $0x30] sm:$0xff] }
  0x1a   :  { %v114_v9 = vpack.c.bf16 %v97_v8, %v97_v8  ;;  %v116_v11 = vperm.slane %v115_v10, 0  ;;  %v526_v17 = vld [vmem:[#allocation7 + $0x38] sm:$0xff]  ;;  %v524_v19 = vld [vmem:[#allocation7 + $0x28] sm:$0xff]  ;;  %v523_v20 = vld [vmem:[#allocation7 + $0x20] sm:$0xff]  ;;  %v201_v39 = vperm.slane %v115_v10, 1  ;;  %v203_v42 = vperm.slane %v115_v10, 2 }
  0x1b   :  { %166 = vmatpush.bf16.msra.mxu0 %v517_v1  ;;  %273 = vmatpush.bf16.msra.mxu1 %v526_v17  ;;  %v522_v21 = vld [vmem:[#allocation7 + $0x18] sm:$0xff]  ;;  %v521_v22 = vld [vmem:[#allocation7 + $0x10] sm:$0xff]  ;;  %v520_v23 = vld [vmem:[#allocation7 + $0x8] sm:$0xff] }
  0x1c   :  { %v519_v25 = vld [vmem:[#allocation7] sm:$0xff]  ;;  %v223_v46 = vld [vmem:[#allocation10 + $0x8] sm:$0xff]  ;;  %v534_v53 = vld [vmem:[#allocation8 + $0x38] sm:$0xff] }
  0x1d   :  { %v224_v47 = vperm.slane %v223_v46, 0  ;;  %381 = vmatpush.bf16.msra.mxu2 %v534_v53  ;;  %v533_v54 = vld [vmem:[#allocation8 + $0x30] sm:$0xff]  ;;  %v532_v55 = vld [vmem:[#allocation8 + $0x28] sm:$0xff]  ;;  %v531_v56 = vld [vmem:[#allocation8 + $0x20] sm:$0xff] }
  0x1e   :  { %v530_v57 = vld [vmem:[#allocation8 + $0x18] sm:$0xff]  ;;  %v529_v58 = vld [vmem:[#allocation8 + $0x10] sm:$0xff]  ;;  %v528_v59 = vld [vmem:[#allocation8 + $0x8] sm:$0xff] }
  0x1f   :  { %167 = vmatpush.bf16.msra.mxu0 %v516_v2  ;;  %274 = vmatpush.bf16.msra.mxu1 %v525_v18  ;;  %v527_v61 = vld [vmem:[#allocation8] sm:$0xff]  ;;  %v331_v18 = vld [vmem:[#allocation10 + $0x10] sm:$0xff] }
  0x21   :  { %382 = vmatpush.bf16.msra.mxu2 %v533_v54 }
  0x23   :  { %168 = vmatpush.bf16.msra.mxu0 %v515_v3  ;;  %275 = vmatpush.bf16.msra.mxu1 %v524_v19  ;;  %v332_v19 = vperm.slane %v331_v18, 0 }
  0x25   :  { %383 = vmatpush.bf16.msra.mxu2 %v532_v55 }
  0x27   :  { %169 = vmatpush.bf16.msra.mxu0 %v514_v4  ;;  %276 = vmatpush.bf16.msra.mxu1 %v523_v20 }
  0x29   :  { %384 = vmatpush.bf16.msra.mxu2 %v531_v56 }
  0x2b   :  { %170 = vmatpush.bf16.msra.mxu0 %v513_v5  ;;  %277 = vmatpush.bf16.msra.mxu1 %v522_v21 }
  0x2d   :  { %385 = vmatpush.bf16.msra.mxu2 %v530_v57 }
  0x2f   :  { %171 = vmatpush.bf16.msra.mxu0 %v512_v6  ;;  %278 = vmatpush.bf16.msra.mxu1 %v521_v22 }
  0x31   :  { %386 = vmatpush.bf16.msra.mxu2 %v529_v58 }
  0x33   :  { %172 = vmatpush.bf16.msra.mxu0 %v511_v7  ;;  %279 = vmatpush.bf16.msra.mxu1 %v520_v23 }
  0x35   :  { %387 = vmatpush.bf16.msra.mxu2 %v528_v59 }
  0x36   :  { %173 = vmatmul.bf16.vlgmr.msra.gmra.mxu0 %v114_v9 }
  0x37   :  { %280 = vmatpush.bf16.msra.mxu1 %v519_v25 }
  0x39   :  { %388 = vmatpush.bf16.msra.mxu2 %v527_v61 }
  0xb3   :  { %v174_v12 = vpop.f32.mrf.mxu0 }
  0xb4   :  { %v175_v13 = vadd.f32 %v174_v12, %v116_v11  ;;  %v309_v11 = vperm.slane %v223_v46, 1 }
  0xb6   :  { %v178_v14 = vmax.f32 %v175_v13, 0.0 }
  0xb8   :  { %179 = vadd.xlane.f32.xlu0 %v178_v14  ;;  %v182_v16 = vmul.f32 %v178_v14, %v178_v14 }
  0xbb   :  { %v176_v15 = vpop.f32.mrf.mxu0 }
  0xc0   :  { %183 = vadd.xlane.f32.xlu0 %v182_v16 }
 0x12b   :  { %v180_v24 = vpop.xlane.xlu0 %179 }
 0x12c   :  { %v181_v26 = vmul.f32 0.015625, %v180_v24 }
 0x12e   :  { %v186_v28 = vmul.f32 %v181_v26, %v181_v26  ;;  %v188_v38 = vsub.f32 %v178_v14, %v181_v26  ;;  %v311_v14 = vperm.slane %v223_v46, 2 }
 0x133   :  { %v184_v27 = vpop.xlane.xlu0 %183 }
 0x134   :  { %v185_v29 = vmul.f32 0.015625, %v184_v27 }
 0x136   :  { %v187_v30 = vsub.f32 %v185_v29, %v186_v28 }
 0x138   :  { %v189_v31 = vadd.f32 1e-05, %v187_v30 }
 0x13a   :  { %545 = vrsqrt.f32 %v189_v31  ;;  %vm196_vm1 = vweird.f32 %v189_v31 }
 0x140   :  { %v546_v32 = vpop.eup %545 }
 0x141   :  { %v191_v33 = vmul.f32 %v546_v32, %v189_v31  ;;  %vm197_vm0 = vweird.f32 %v546_v32 }
 0x142   :  { %vm198_vm2 = vmor %vm196_vm1, %vm197_vm0 }
 0x143   :  { %v192_v34 = vmul.f32 %v546_v32, %v191_v33 }
 0x145   :  { %v193_v35 = vmul.f32 0.5, %v192_v34 }
 0x147   :  { %v194_v36 = vsub.f32 1.5, %v193_v35 }
 0x149   :  { %v195_v37 = vmul.f32 %v546_v32, %v194_v36 }
 0x14b   :  { %v199_v40 = vsel %vm198_vm2, %v546_v32, %v195_v37 }
 0x14c   :  { %v200_v41 = vmul.f32 %v199_v40, %v188_v38 }
 0x14e   :  { %v202_v43 = vmul.f32 %v201_v39, %v200_v41 }
 0x150   :  { %v204_v44 = vadd.f32 %v203_v42, %v202_v43 }
 0x152   :  { %v221_v45 = vpack.c.bf16 %v204_v44, %v204_v44 }
 0x154   :  { %281 = vmatmul.bf16.vlgmr.msra.gmra.mxu1 %v221_v45 }
 0x1d1   :  { %v282_v48 = vpop.f32.mrf.mxu1 }
 0x1d2   :  { %v283_v49 = vadd.f32 %v282_v48, %v224_v47 }
 0x1d4   :  { %v286_v50 = vmax.f32 %v283_v49, 0.0 }
 0x1d6   :  { %287 = vadd.xlane.f32.xlu1 %v286_v50  ;;  %v290_v52 = vmul.f32 %v286_v50, %v286_v50 }
 0x1d9   :  { %v284_v51 = vpop.f32.mrf.mxu1 }
 0x1de   :  { %291 = vadd.xlane.f32.xlu1 %v290_v52 }
 0x249   :  { %v288_v60 = vpop.xlane.xlu1 %287 }
 0x24a   :  { %v289_v62 = vmul.f32 0.015625, %v288_v60 }
 0x24c   :  { %v294_v0 = vmul.f32 %v289_v62, %v289_v62  ;;  %v296_v10 = vsub.f32 %v286_v50, %v289_v62 }
 0x251   :  { %v292_v63 = vpop.xlane.xlu1 %291 }
 0x252   :  { %v293_v1 = vmul.f32 0.015625, %v292_v63 }
 0x254   :  { %v295_v2 = vsub.f32 %v293_v1, %v294_v0 }
 0x256   :  { %v297_v3 = vadd.f32 1e-05, %v295_v2 }
 0x258   :  { %547 = vrsqrt.f32 %v297_v3  ;;  %vm304_vm4 = vweird.f32 %v297_v3 }
 0x25e   :  { %v548_v4 = vpop.eup %547 }
 0x25f   :  { %v299_v5 = vmul.f32 %v548_v4, %v297_v3  ;;  %vm305_vm3 = vweird.f32 %v548_v4 }
 0x260   :  { %vm306_vm5 = vmor %vm304_vm4, %vm305_vm3 }
 0x261   :  { %v300_v6 = vmul.f32 %v548_v4, %v299_v5 }
 0x263   :  { %v301_v7 = vmul.f32 0.5, %v300_v6 }
 0x265   :  { %v302_v8 = vsub.f32 1.5, %v301_v7 }
 0x267   :  { %v303_v9 = vmul.f32 %v548_v4, %v302_v8 }
 0x269   :  { %v307_v12 = vsel %vm306_vm5, %v548_v4, %v303_v9 }
 0x26a   :  { %v308_v13 = vmul.f32 %v307_v12, %v296_v10 }
 0x26c   :  { %v310_v15 = vmul.f32 %v309_v11, %v308_v13 }
 0x26e   :  { %v312_v16 = vadd.f32 %v311_v14, %v310_v15 }
 0x270   :  { %v329_v17 = vpack.c.bf16 %v312_v16, %v312_v16 }
 0x272   :  { %389 = vmatmul.bf16.vlgmr.msra.gmra.mxu2 %v329_v17 }
 0x2f5   :  { %v390_v20 = vpop.f32.mrf.mxu2 }
 0x2f6   :  { %v391_v21 = vadd.f32 %v390_v20, %v332_v19 }
 0x2f8   :  { %v394_v22 = vmax.f32 %v391_v21, 0.0 }
 0x2fa   :  { %395 = vst [vmem:[#allocation11] sm:$0xff] %v394_v22 }
 0x2fb   :  { %406 = dma.vmem_to_hbm [thread:$0]  %s402_s4, 128, %s404_s21, [#allocation4]  }
 0x2fd   :  { %v392_v23 = vpop.f32.mrf.mxu2 }
 0x2fe   :  { %699 = dma.done.wait [#allocation4], 128  }
 0x2ff   :  { %700 = vsyncadd [#allocation4], 4294967168 }
 0x300   :  { %411 = vsyncpa [#allocation3], 1 }
 0x301   :  { %412 = vsyncpa [#allocation6], 1 }
 0x302   :  { %413 = vsyncpa [#allocation9], 1 }
 0x303   :  { %414 = vsyncpa [#allocation4], 1 }

// kernel: tpu_custom_call.1
= control target key start
LH: loop header
LB: loop body
LE: loop exit
PB: predicated region body
PF: predicated region fallthrough
CT: control target
= control target key end

     0   :  { %10 = vsyncpa [#allocation3], 0  ;;  %s759_s0 = inlined_call_operand.hbm [shape: f32[8,128], index: 0, kind: input, shape index: {}]   ;;  %s760_s1 = inlined_call_operand.hbm [shape: bf16[128,128], index: 1, kind: input, shape index: {}]   ;;  %s761_s2 = inlined_call_operand.hbm [shape: bf16[128,128], index: 2, kind: input, shape index: {}]   ;;  %s762_s3 = inlined_call_operand.hbm [shape: bf16[128,128], index: 3, kind: input, shape index: {}]   ;;  %s763_s4 = inlined_call_operand.hbm [shape: f32[3,8,128], index: 4, kind: input, shape index: {}]   ;;  %s764_s5 = inlined_call_operand.hbm [shape: f32[8,128], index: 5, kind: output, shape index: {}]  }
   0x1   :  { %11 = vsyncpa [#allocation6], 0 }
   0x2   :  { %12 = vsyncpa [#allocation9], 0  ;;  %s29_s20 = sshll.u32 %s760_s1, 4  ;;  %s30_s20 = int_to_ptr.hbm [resolvable:$true] %s29_s20 }
   0x3   :  { %13 = vsyncpa [#allocation4], 0  ;;  %s701_s21 = smov [#allocation5]   ;;  %s55_s25 = sshll.u32 %s762_s3, 4  ;;  %s56_s25 = int_to_ptr.hbm [resolvable:$true] %s55_s25 }
   0x4   :  { %s31_s22 = sshll.u32 %s701_s21, 4  ;;  %s702_s26 = smov 64   ;;  %s32_s22 = int_to_ptr.vmem [resolvable:$true] %s31_s22 }
   0x5   :  { %s703_s27 = smov 4   ;;  %s704_s28 = smov [#allocation8]  }
   0x6   :  { %37 = dma.hbm_to_vmem [thread:$0]  %s30_s20, 1024, %s32_s22, [#allocation6], %s702_s26, %s702_s26, %s703_s27  }
   0x7   :  { %s57_s29 = sshll.u32 %s704_s28, 4  ;;  %s19_s7 = sshll.u32 %s759_s0, 4  ;;  %s58_s29 = int_to_ptr.vmem [resolvable:$true] %s57_s29  ;;  %s20_s7 = int_to_ptr.hbm [resolvable:$true] %s19_s7 }
   0x8   :  { %63 = dma.hbm_to_vmem [thread:$0]  %s56_s25, 1024, %s58_s29, [#allocation9], %s702_s26, %s702_s26, %s703_s27  }
   0x9   :  { %s42_s9 = sshll.u32 %s761_s2, 4  ;;  %s705_s10 = smov [#allocation2]   ;;  %s43_s9 = int_to_ptr.hbm [resolvable:$true] %s42_s9 }
   0xa   :  { %s21_s11 = sshll.u32 %s705_s10, 4  ;;  %s706_s3 = smov [#allocation7]   ;;  %s22_s11 = int_to_ptr.vmem [resolvable:$true] %s21_s11 }
   0xb   :  { %24 = dma.hbm_to_vmem [thread:$0]  %s20_s7, 128, %s22_s11, [#allocation3]  }
   0xc   :  { %s44_s12 = sshll.u32 %s706_s3, 4  ;;  %s68_s15 = sshll.u32 %s763_s4, 4  ;;  %s45_s12 = int_to_ptr.vmem [resolvable:$true] %s44_s12  ;;  %s69_s15 = int_to_ptr.hbm [resolvable:$true] %s68_s15 }
   0xd   :  { %50 = dma.hbm_to_vmem [thread:$0]  %s43_s9, 1024, %s45_s12, [#allocation6], %s702_s26, %s702_s26, %s703_s27  }
   0xe   :  { %s707_s0 = smov [#allocation10]   ;;  %s708_s17 = smov 128  }
   0xf   :  { %s70_s16 = sshll.u32 %s707_s0, 4  ;;  %s709_s18 = smov 8   ;;  %s71_s16 = int_to_ptr.vmem [resolvable:$true] %s70_s16 }
  0x10   :  { %76 = dma.hbm_to_vmem [thread:$0]  %s69_s15, 384, %s71_s16, [#allocation9], %s708_s17, %s708_s17, %s709_s18  }
  0x11   :  { %693 = dma.done.wait [#allocation3], 128  }
  0x12   :  { %694 = vsyncadd [#allocation3], 4294967168 }
  0x13   :  { %695 = dma.done.wait [#allocation6], 2048  }
  0x14   :  { %696 = vsyncadd [#allocation6], 4294965248 }
  0x15   :  { %697 = dma.done.wait [#allocation9], 1408  }
  0x16   :  { %698 = vsyncadd [#allocation9], 4294965888  ;;  %v518_v0 = vld [vmem:[#allocation5 + $0x38] sm:$0xff]  ;;  %v517_v1 = vld [vmem:[#allocation5 + $0x30] sm:$0xff]  ;;  %s710_s2 = smov [#allocation11]   ;;  %s403_s21 = sshll.u32 %s764_s5, 4  ;;  %s404_s21 = int_to_ptr.hbm [resolvable:$true] %s403_s21 }
  0x17   :  { %165 = vmatpush.bf16.msra.mxu0 %v518_v0  ;;  %v516_v2 = vld [vmem:[#allocation5 + $0x28] sm:$0xff]  ;;  %v515_v3 = vld [vmem:[#allocation5 + $0x20] sm:$0xff]  ;;  %v514_v4 = vld [vmem:[#allocation5 + $0x18] sm:$0xff]  ;;  %s401_s4 = sshll.u32 %s710_s2, 4  ;;  %s402_s4 = int_to_ptr.vmem [resolvable:$true] %s401_s4 }
  0x18   :  { %v513_v5 = vld [vmem:[#allocation5 + $0x10] sm:$0xff]  ;;  %v512_v6 = vld [vmem:[#allocation5 + $0x8] sm:$0xff]  ;;  %v511_v7 = vld [vmem:[#allocation5] sm:$0xff] }
  0x19   :  { %v97_v8 = vld [vmem:[#allocation2] sm:$0xff]  ;;  %v115_v10 = vld [vmem:[#allocation10] sm:$0xff]  ;;  %v525_v18 = vld [vmem:[#allocation7 + $0x30] sm:$0xff] }
  0x1a   :  { %v114_v9 = vpack.c.bf16 %v97_v8, %v97_v8  ;;  %v116_v11 = vperm.slane %v115_v10, 0  ;;  %v526_v17 = vld [vmem:[#allocation7 + $0x38] sm:$0xff]  ;;  %v524_v19 = vld [vmem:[#allocation7 + $0x28] sm:$0xff]  ;;  %v523_v20 = vld [vmem:[#allocation7 + $0x20] sm:$0xff]  ;;  %v201_v39 = vperm.slane %v115_v10, 1  ;;  %v203_v42 = vperm.slane %v115_v10, 2 }
  0x1b   :  { %166 = vmatpush.bf16.msra.mxu0 %v517_v1  ;;  %273 = vmatpush.bf16.msra.mxu1 %v526_v17  ;;  %v522_v21 = vld [vmem:[#allocation7 + $0x18] sm:$0xff]  ;;  %v521_v22 = vld [vmem:[#allocation7 + $0x10] sm:$0xff]  ;;  %v520_v23 = vld [vmem:[#allocation7 + $0x8] sm:$0xff] }
  0x1c   :  { %v519_v25 = vld [vmem:[#allocation7] sm:$0xff]  ;;  %v223_v46 = vld [vmem:[#allocation10 + $0x8] sm:$0xff]  ;;  %v534_v53 = vld [vmem:[#allocation8 + $0x38] sm:$0xff] }
  0x1d   :  { %v224_v47 = vperm.slane %v223_v46, 0  ;;  %381 = vmatpush.bf16.msra.mxu2 %v534_v53  ;;  %v533_v54 = vld [vmem:[#allocation8 + $0x30] sm:$0xff]  ;;  %v532_v55 = vld [vmem:[#allocation8 + $0x28] sm:$0xff]  ;;  %v531_v56 = vld [vmem:[#allocation8 + $0x20] sm:$0xff] }
  0x1e   :  { %v530_v57 = vld [vmem:[#allocation8 + $0x18] sm:$0xff]  ;;  %v529_v58 = vld [vmem:[#allocation8 + $0x10] sm:$0xff]  ;;  %v528_v59 = vld [vmem:[#allocation8 + $0x8] sm:$0xff] }
  0x1f   :  { %167 = vmatpush.bf16.msra.mxu0 %v516_v2  ;;  %274 = vmatpush.bf16.msra.mxu1 %v525_v18  ;;  %v527_v61 = vld [vmem:[#allocation8] sm:$0xff]  ;;  %v331_v18 = vld [vmem:[#allocation10 + $0x10] sm:$0xff] }
  0x21   :  { %382 = vmatpush.bf16.msra.mxu2 %v533_v54 }
  0x23   :  { %168 = vmatpush.bf16.msra.mxu0 %v515_v3  ;;  %275 = vmatpush.bf16.msra.mxu1 %v524_v19  ;;  %v332_v19 = vperm.slane %v331_v18, 0 }
  0x25   :  { %383 = vmatpush.bf16.msra.mxu2 %v532_v55 }
  0x27   :  { %169 = vmatpush.bf16.msra.mxu0 %v514_v4  ;;  %276 = vmatpush.bf16.msra.mxu1 %v523_v20 }
  0x29   :  { %384 = vmatpush.bf16.msra.mxu2 %v531_v56 }
  0x2b   :  { %170 = vmatpush.bf16.msra.mxu0 %v513_v5  ;;  %277 = vmatpush.bf16.msra.mxu1 %v522_v21 }
  0x2d   :  { %385 = vmatpush.bf16.msra.mxu2 %v530_v57 }
  0x2f   :  { %171 = vmatpush.bf16.msra.mxu0 %v512_v6  ;;  %278 = vmatpush.bf16.msra.mxu1 %v521_v22 }
  0x31   :  { %386 = vmatpush.bf16.msra.mxu2 %v529_v58 }
  0x33   :  { %172 = vmatpush.bf16.msra.mxu0 %v511_v7  ;;  %279 = vmatpush.bf16.msra.mxu1 %v520_v23 }
  0x35   :  { %387 = vmatpush.bf16.msra.mxu2 %v528_v59 }
  0x36   :  { %173 = vmatmul.bf16.vlgmr.msra.gmra.mxu0 %v114_v9 }
  0x37   :  { %280 = vmatpush.bf16.msra.mxu1 %v519_v25 }
  0x39   :  { %388 = vmatpush.bf16.msra.mxu2 %v527_v61 }
  0xb3   :  { %v174_v12 = vpop.f32.mrf.mxu0 }
  0xb4   :  { %v175_v13 = vadd.f32 %v174_v12, %v116_v11  ;;  %v309_v11 = vperm.slane %v223_v46, 1 }
  0xb6   :  { %v178_v14 = vmax.f32 %v175_v13, 0.0 }
  0xb8   :  { %179 = vadd.xlane.f32.xlu0 %v178_v14  ;;  %v182_v16 = vmul.f32 %v178_v14, %v178_v14 }
  0xbb   :  { %v176_v15 = vpop.f32.mrf.mxu0 }
  0xc0   :  { %183 = vadd.xlane.f32.xlu0 %v182_v16 }
 0x12b   :  { %v180_v24 = vpop.xlane.xlu0 %179 }
 0x12c   :  { %v181_v26 = vmul.f32 0.015625, %v180_v24 }
 0x12e   :  { %v186_v28 = vmul.f32 %v181_v26, %v181_v26  ;;  %v188_v38 = vsub.f32 %v178_v14, %v181_v26  ;;  %v311_v14 = vperm.slane %v223_v46, 2 }
 0x133   :  { %v184_v27 = vpop.xlane.xlu0 %183 }
 0x134   :  { %v185_v29 = vmul.f32 0.015625, %v184_v27 }
 0x136   :  { %v187_v30 = vsub.f32 %v185_v29, %v186_v28 }
 0x138   :  { %v189_v31 = vadd.f32 1e-05, %v187_v30 }
 0x13a   :  { %545 = vrsqrt.f32 %v189_v31  ;;  %vm196_vm1 = vweird.f32 %v189_v31 }
 0x140   :  { %v546_v32 = vpop.eup %545 }
 0x141   :  { %v191_v33 = vmul.f32 %v546_v32, %v189_v31  ;;  %vm197_vm0 = vweird.f32 %v546_v32 }
 0x142   :  { %vm198_vm2 = vmor %vm196_vm1, %vm197_vm0 }
 0x143   :  { %v192_v34 = vmul.f32 %v546_v32, %v191_v33 }
 0x145   :  { %v193_v35 = vmul.f32 0.5, %v192_v34 }
 0x147   :  { %v194_v36 = vsub.f32 1.5, %v193_v35 }
 0x149   :  { %v195_v37 = vmul.f32 %v546_v32, %v194_v36 }
 0x14b   :  { %v199_v40 = vsel %vm198_vm2, %v546_v32, %v195_v37 }
 0x14c   :  { %v200_v41 = vmul.f32 %v199_v40, %v188_v38 }
 0x14e   :  { %v202_v43 = vmul.f32 %v201_v39, %v200_v41 }
 0x150   :  { %v204_v44 = vadd.f32 %v203_v42, %v202_v43 }
 0x152   :  { %v221_v45 = vpack.c.bf16 %v204_v44, %v204_v44 }
 0x154   :  { %281 = vmatmul.bf16.vlgmr.msra.gmra.mxu1 %v221_v45 }
 0x1d1   :  { %v282_v48 = vpop.f32.mrf.mxu1 }
 0x1d2   :  { %v283_v49 = vadd.f32 %v282_v48, %v224_v47 }
 0x1d4   :  { %v286_v50 = vmax.f32 %v283_v49, 0.0 }
 0x1d6   :  { %287 = vadd.xlane.f32.xlu1 %v286_v50  ;;  %v290_v52 = vmul.f32 %v286_v50, %v286_v50 }
 0x1d9   :  { %v284_v51 = vpop.f32.mrf.mxu1 }
 0x1de   :  { %291 = vadd.xlane.f32.xlu1 %v290_v52 }
 0x249   :  { %v288_v60 = vpop.xlane.xlu1 %287 }
 0x24a   :  { %v289_v62 = vmul.f32 0.015625, %v288_v60 }
 0x24c   :  { %v294_v0 = vmul.f32 %v289_v62, %v289_v62  ;;  %v296_v10 = vsub.f32 %v286_v50, %v289_v62 }
 0x251   :  { %v292_v63 = vpop.xlane.xlu1 %291 }
 0x252   :  { %v293_v1 = vmul.f32 0.015625, %v292_v63 }
 0x254   :  { %v295_v2 = vsub.f32 %v293_v1, %v294_v0 }
 0x256   :  { %v297_v3 = vadd.f32 1e-05, %v295_v2 }
 0x258   :  { %547 = vrsqrt.f32 %v297_v3  ;;  %vm304_vm4 = vweird.f32 %v297_v3 }
 0x25e   :  { %v548_v4 = vpop.eup %547 }
 0x25f   :  { %v299_v5 = vmul.f32 %v548_v4, %v297_v3  ;;  %vm305_vm3 = vweird.f32 %v548_v4 }
 0x260   :  { %vm306_vm5 = vmor %vm304_vm4, %vm305_vm3 }
 0x261   :  { %v300_v6 = vmul.f32 %v548_v4, %v299_v5 }
 0x263   :  { %v301_v7 = vmul.f32 0.5, %v300_v6 }
 0x265   :  { %v302_v8 = vsub.f32 1.5, %v301_v7 }
 0x267   :  { %v303_v9 = vmul.f32 %v548_v4, %v302_v8 }
 0x269   :  { %v307_v12 = vsel %vm306_vm5, %v548_v4, %v303_v9 }
 0x26a   :  { %v308_v13 = vmul.f32 %v307_v12, %v296_v10 }
 0x26c   :  { %v310_v15 = vmul.f32 %v309_v11, %v308_v13 }
 0x26e   :  { %v312_v16 = vadd.f32 %v311_v14, %v310_v15 }
 0x270   :  { %v329_v17 = vpack.c.bf16 %v312_v16, %v312_v16 }
 0x272   :  { %389 = vmatmul.bf16.vlgmr.msra.gmra.mxu2 %v329_v17 }
 0x2f5   :  { %v390_v20 = vpop.f32.mrf.mxu2 }
 0x2f6   :  { %v391_v21 = vadd.f32 %v390_v20, %v332_v19 }
 0x2f8   :  { %v394_v22 = vmax.f32 %v391_v21, 0.0 }
 0x2fa   :  { %395 = vst [vmem:[#allocation11] sm:$0xff] %v394_v22 }
 0x2fb   :  { %406 = dma.vmem_to_hbm [thread:$0]  %s402_s4, 128, %s404_s21, [#allocation4]  }
 0x2fd   :  { %v392_v23 = vpop.f32.mrf.mxu2 }
 0x2fe   :  { %699 = dma.done.wait [#allocation4], 128  }
 0x2ff   :  { %700 = vsyncadd [#allocation4], 4294967168 }
 0x300   :  { %411 = vsyncpa [#allocation3], 1 }
 0x301   :  { %412 = vsyncpa [#allocation6], 1 }
 0x302   :  { %413 = vsyncpa [#allocation9], 1 }
 0x303   :  { %414 = vsyncpa [#allocation4], 1 }

</bundles_post_ra>
